<compile_context>
chip_gen: v7x
topology: tpu7x:2x2x1
jax: 0.10.0
libtpu: 0.0.40
codegen_flags: <defaults>
</compile_context>

<pallas_src>
import numpy as np
import jax
import jax.numpy as jnp
from jax.experimental import pallas as pl
from jax.experimental.pallas import tpu as pltpu


# ----------------------------------------------------------------------------
# Fused kernel: score both models, calibrate, entropy-route, predict.
# ----------------------------------------------------------------------------
def fused_calibration_kernel(scal_ref, x_ref, w_ref, out_ref):
    """scal_ref : SMEM (8,) f32 = [b_small, b_large, 1/ts, 1/p_cf0, 1/p_cf1, 0,0,0]
       x_ref    : VMEM (TB, D)   input-feature tile
       w_ref    : VMEM (D, 128)  col 0 = w_small, col 1 = w_large, rest zero
       out_ref  : VMEM (TB, 128) packed result slab:
                  col 0 small_prob | 1 large_prob | 2 cal_p | 3 route_mask
                  col 4 small_pred | 5 large_pred | 6.. padding
    """
    b_small = scal_ref[0]
    b_large = scal_ref[1]
    inv_ts = scal_ref[2]
    inv_p0 = scal_ref[3]
    inv_p1 = scal_ref[4]

    # Both scorers' logits from one full-width MXU pass.
    logits = jnp.dot(x_ref[...], w_ref[...], preferred_element_type=jnp.float32)

    ls = (logits[:, 0:1] + b_small) * inv_ts          # (TB, 1) small-model logits
    ll = logits[:, 1:2] + b_large                     # (TB, 1) large-model logits

    sp = 1.0 / (1.0 + jnp.exp(-ls))                   # small-model probability
    lp = 1.0 / (1.0 + jnp.exp(-ll))                   # large-model probability

    # calibrate_py(mode='diagonal'): W = diag(1/p_cf), then renormalize.
    c0 = (1.0 - sp) * inv_p0
    c1 = sp * inv_p1
    # Exact divide kept on purpose: the calibrated probs are checked to 1e-5;
    # pl.reciprocal(..., approx=True) (~2^-12 rel err) would be a drop-in
    # if the tolerance were looser.
    p = c1 / (c0 + c1)

    # Binary entropy (bits).  NaN at p in {0,1}; NaN > 0.5 is False, matching
    # the torch reference (those rows stay on the small model).
    ent = -p * jnp.log2(p) - (1.0 - p) * jnp.log2(1.0 - p)

    route = (ent > 0.5).astype(jnp.float32)           # 1.0 -> route to large model
    spred = (sp > 0.5).astype(jnp.float32)
    lpred = (lp > 0.5).astype(jnp.float32)

    # Pack into one lane-dense slab -> a single unmasked full-tile store.
    lane = jax.lax.broadcasted_iota(jnp.int32, out_ref.shape, 1)
    slab = jnp.where(lane == 0, sp, 0.0)
    slab = jnp.where(lane == 1, lp, slab)
    slab = jnp.where(lane == 2, p, slab)
    slab = jnp.where(lane == 3, route, slab)
    slab = jnp.where(lane == 4, spred, slab)
    slab = jnp.where(lane == 5, lpred, slab)
    out_ref[...] = slab


def _round_up(v, m):
    return -(-v // m) * m


def fused_calibration_call(x, w_small, b_small, w_large, b_large,
                           batch_prob=None, ts=1.0, block_b=256):
    """Runs the fused kernel; returns the (B, 128) packed f32 slab (on device)."""
    x = jnp.asarray(x, jnp.float32)
    B, D = x.shape

    # Batch tile: whole (padded-to-8) batch when B is tiny, otherwise up to
    # `block_b` rows — capped so double-buffered x tiles stay within ~8 MiB of
    # VMEM even for very wide feature dims (v7x has only 64 MiB total VMEM).
    vmem_budget = 8 * 1024 * 1024
    max_tb = max(8, (vmem_budget // max(1, D * 4 * 2)) // 8 * 8)
    TB = min(block_b, max_tb)
    if B <= TB:
        TB = _round_up(B, 8)
    B_pad = _round_up(B, TB)
    if B_pad != B:
        x = jnp.pad(x, ((0, B_pad - B), (0, 0)))

    # Stacked + lane-padded weights: one MXU matmul feeds both scorers.
    w_s = jnp.asarray(w_small, jnp.float32).reshape(D, 1)
    w_l = jnp.asarray(w_large, jnp.float32).reshape(D, 1)
    w_stack = jnp.concatenate([w_s, w_l, jnp.zeros((D, 126), jnp.float32)], axis=1)

    if batch_prob is None:
        inv_p0 = inv_p1 = 1.0          # reduces exactly to p == small_probs
    else:
        pcf = np.asarray(batch_prob, np.float64)
        inv_p0, inv_p1 = float(1.0 / pcf[0]), float(1.0 / pcf[1])

    scalars = jnp.array([float(b_small), float(b_large), float(1.0 / ts),
                         inv_p0, inv_p1, 0.0, 0.0, 0.0], jnp.float32)

    slab = pl.pallas_call(
        fused_calibration_kernel,
        out_shape=jax.ShapeDtypeStruct((B_pad, 128), jnp.float32),
        grid=(B_pad // TB,),
        in_specs=[
            pl.BlockSpec(memory_space=pltpu.MemorySpace.SMEM),   # scalar params
            pl.BlockSpec((TB, D), lambda i: (i, 0)),             # x batch tile
            pl.BlockSpec((D, 128), lambda i: (0, 0)),            # stacked weights
        ],
        out_specs=pl.BlockSpec((TB, 128), lambda i: (i, 0)),
        compiler_params=pltpu.CompilerParams(
            dimension_semantics=("parallel",)),
    )(scalars, x, w_stack)
    return slab[:B]


# ----------------------------------------------------------------------------
# CalibrationModel.forward equivalent
# ----------------------------------------------------------------------------
def calibration_forward(x, labels, w_small, b_small, w_large, b_large,
                        batch_prob=None, ts=1.0):
    slab = fused_calibration_call(x, w_small, b_small, w_large, b_large,
                                  batch_prob=batch_prob, ts=ts)
    jax.block_until_ready(slab)
    res = np.asarray(slab)                 # single packed D2H transfer

    sp, lp, cal = res[:, 0], res[:, 1], res[:, 2]
    lm = res[:, 3] > 0.5                   # route-to-large mask
    sm = ~lm
    s_preds = res[:, 4].astype(np.int64)
    l_preds = res[:, 5].astype(np.int64)
    labels = np.asarray(labels)

    # TODO(synk): boolean-mask compaction with data-dependent output length is
    # kept on host (could be moved on-device with a cumsum-scatter into a
    # fixed-capacity buffer if dynamic-shape results aren't required).
    return {
        "num_large": int(lm.sum()),
        "probs": np.concatenate([sp[sm], lp[lm]]),
        "preds": np.concatenate([s_preds[sm], l_preds[lm]]),
        "final_labels": np.concatenate([labels[sm], labels[lm]]),
        "calibrated_p": cal,
    }


if __name__ == "__main__":
    B, D = 8, 32
    key = jax.random.PRNGKey(0)
    kx, kl, kws, kwl = jax.random.split(key, 4)

    x = jax.random.normal(kx, (B, D), jnp.float32)                  # "embedded prompts"
    labels = np.asarray(jax.random.bernoulli(kl, 0.5, (B,))).astype(np.int64)
    w_small = jax.random.normal(kws, (D, 1), jnp.float32) * 0.3
    b_small = 0.1
    w_large = jax.random.normal(kwl, (D, 1), jnp.float32) * 0.3
    b_large = -0.05
    batch_prob = jnp.array([0.4, 0.6], jnp.float32)                 # p_cf
    ts = 1.0

    out = calibration_forward(x, labels, w_small, b_small, w_large, b_large,
                              batch_prob=batch_prob, ts=ts)

    # ---- pure-numpy reference check ----------------------------------------
    xn = np.asarray(x)
    sp_ref = 1.0 / (1.0 + np.exp(-((xn @ np.asarray(w_small))[:, 0] + b_small) / ts))
    c0 = (1.0 - sp_ref) / 0.4
    c1 = sp_ref / 0.6
    p_ref = c1 / (c0 + c1)
    ent_ref = -p_ref * np.log2(p_ref) - (1 - p_ref) * np.log2(1 - p_ref)
    lm_ref = ent_ref > 0.5
    lp_ref = 1.0 / (1.0 + np.exp(-((xn @ np.asarray(w_large))[:, 0] + b_large)))
    probs_ref = np.concatenate([sp_ref[~lm_ref], lp_ref[lm_ref]])
    preds_ref = np.concatenate([(sp_ref[~lm_ref] > 0.5).astype(np.int64),
                                (lp_ref[lm_ref] > 0.5).astype(np.int64)])
    labels_ref = np.concatenate([labels[~lm_ref], labels[lm_ref]])

    assert np.allclose(out["calibrated_p"], p_ref, atol=1e-5)
    assert out["num_large"] == int(lm_ref.sum())
    assert np.allclose(out["probs"], probs_ref, atol=1e-5)
    assert np.array_equal(out["preds"], preds_ref)
    assert np.array_equal(out["final_labels"], labels_ref)

    # batch_prob=None branch (p == small_probs)
    out2 = calibration_forward(x, labels, w_small, b_small, w_large, b_large,
                               batch_prob=None, ts=ts)
    assert np.allclose(out2["calibrated_p"], sp_ref, atol=1e-5)

    print("KERNEL_OK")
</pallas_src>

<mosaic_0001>
module attributes {stable_mosaic.version = 11 : i64} {
  func.func @fused_calibration_kernel(%arg0: i32, %arg1: memref<8xf32, #tpu.memory_space<smem>>, %arg2: memref<8x32xf32, #tpu.memory_space<vmem>>, %arg3: memref<32x128xf32, #tpu.memory_space<vmem>>, %arg4: memref<8x128xf32, #tpu.memory_space<vmem>>) attributes {dimension_semantics = [#tpu.dimension_semantics<parallel>], iteration_bounds = array<i64: 1>, scalar_prefetch = 0 : i64, scratch_operands = 0 : i64, tpu.core_type = #tpu.core_type<tc>, window_params = [{transform_indices = @transform_0, window_bounds = array<i64: 8>}, {transform_indices = @transform_1, window_bounds = array<i64: 8, 32>}, {pipeline_mode = #tpu.pipeline_mode<synchronous>, transform_indices = @transform_2, window_bounds = array<i64: 32, 128>}, {transform_indices = @transform_3, window_bounds = array<i64: 8, 128>}]} {
    %c0 = arith.constant 0 : index
    %0 = memref.load %arg1[%c0] : memref<8xf32, #tpu.memory_space<smem>>
    %c1 = arith.constant 1 : index
    %1 = memref.load %arg1[%c1] : memref<8xf32, #tpu.memory_space<smem>>
    %c2 = arith.constant 2 : index
    %2 = memref.load %arg1[%c2] : memref<8xf32, #tpu.memory_space<smem>>
    %c3 = arith.constant 3 : index
    %3 = memref.load %arg1[%c3] : memref<8xf32, #tpu.memory_space<smem>>
    %c4 = arith.constant 4 : index
    %4 = memref.load %arg1[%c4] : memref<8xf32, #tpu.memory_space<smem>>
    %c0_0 = arith.constant 0 : index
    %c0_1 = arith.constant 0 : index
    %5 = vector.load %arg2[%c0_0, %c0_1] : memref<8x32xf32, #tpu.memory_space<vmem>>, vector<8x32xf32>
    %c0_2 = arith.constant 0 : index
    %c0_3 = arith.constant 0 : index
    %6 = vector.load %arg3[%c0_2, %c0_3] : memref<32x128xf32, #tpu.memory_space<vmem>>, vector<32x128xf32>
    %cst = arith.constant dense<0.000000e+00> : vector<8x128xf32>
    %7 = tpu.matmul %5, %6, %cst {dimension_numbers = #tpu.dot_dimension_numbers<[1], [0], [0], [1], [0, 0, 1, 1], [], []>} : vector<8x32xf32>, vector<32x128xf32>, vector<8x128xf32> -> vector<8x128xf32>
    %8 = vector.extract_strided_slice %7 {offsets = [0, 0], sizes = [8, 1], strides = [1, 1]} : vector<8x128xf32> to vector<8x1xf32>
    %9 = vector.broadcast %0 : f32 to vector<8x1xf32>
    %10 = arith.addf %8, %9 : vector<8x1xf32>
    %11 = vector.broadcast %2 : f32 to vector<8x1xf32>
    %12 = arith.mulf %10, %11 : vector<8x1xf32>
    %13 = vector.extract_strided_slice %7 {offsets = [0, 1], sizes = [8, 1], strides = [1, 1]} : vector<8x128xf32> to vector<8x1xf32>
    %14 = vector.broadcast %1 : f32 to vector<8x1xf32>
    %15 = arith.addf %13, %14 : vector<8x1xf32>
    %cst_4 = arith.constant 0.000000e+00 : f32
    %16 = vector.broadcast %cst_4 : f32 to vector<8x1xf32>
    %17 = arith.subf %16, %12 : vector<8x1xf32>
    %18 = math.exp %17 : vector<8x1xf32>
    %cst_5 = arith.constant 1.000000e+00 : f32
    %19 = vector.broadcast %cst_5 : f32 to vector<8x1xf32>
    %20 = arith.addf %19, %18 : vector<8x1xf32>
    %cst_6 = arith.constant 1.000000e+00 : f32
    %21 = vector.broadcast %cst_6 : f32 to vector<8x1xf32>
    %22 = arith.divf %21, %20 : vector<8x1xf32>
    %cst_7 = arith.constant 0.000000e+00 : f32
    %23 = vector.broadcast %cst_7 : f32 to vector<8x1xf32>
    %24 = arith.subf %23, %15 : vector<8x1xf32>
    %25 = math.exp %24 : vector<8x1xf32>
    %cst_8 = arith.constant 1.000000e+00 : f32
    %26 = vector.broadcast %cst_8 : f32 to vector<8x1xf32>
    %27 = arith.addf %26, %25 : vector<8x1xf32>
    %cst_9 = arith.constant 1.000000e+00 : f32
    %28 = vector.broadcast %cst_9 : f32 to vector<8x1xf32>
    %29 = arith.divf %28, %27 : vector<8x1xf32>
    %cst_10 = arith.constant 1.000000e+00 : f32
    %30 = vector.broadcast %cst_10 : f32 to vector<8x1xf32>
    %31 = arith.subf %30, %22 : vector<8x1xf32>
    %32 = vector.broadcast %3 : f32 to vector<8x1xf32>
    %33 = arith.mulf %31, %32 : vector<8x1xf32>
    %34 = vector.broadcast %4 : f32 to vector<8x1xf32>
    %35 = arith.mulf %22, %34 : vector<8x1xf32>
    %36 = arith.addf %33, %35 : vector<8x1xf32>
    %37 = arith.divf %35, %36 : vector<8x1xf32>
    %cst_11 = arith.constant 0.000000e+00 : f32
    %38 = vector.broadcast %cst_11 : f32 to vector<8x1xf32>
    %39 = arith.subf %38, %37 : vector<8x1xf32>
    %40 = math.log %37 : vector<8x1xf32>
    %cst_12 = arith.constant 2.000000e+00 : f32
    %41 = math.log %cst_12 : f32
    %42 = vector.broadcast %41 : f32 to vector<8x1xf32>
    %43 = arith.divf %40, %42 : vector<8x1xf32>
    %44 = arith.mulf %39, %43 : vector<8x1xf32>
    %cst_13 = arith.constant 1.000000e+00 : f32
    %45 = vector.broadcast %cst_13 : f32 to vector<8x1xf32>
    %46 = arith.subf %45, %37 : vector<8x1xf32>
    %cst_14 = arith.constant 1.000000e+00 : f32
    %47 = vector.broadcast %cst_14 : f32 to vector<8x1xf32>
    %48 = arith.subf %47, %37 : vector<8x1xf32>
    %49 = math.log %48 : vector<8x1xf32>
    %cst_15 = arith.constant 2.000000e+00 : f32
    %50 = math.log %cst_15 : f32
    %51 = vector.broadcast %50 : f32 to vector<8x1xf32>
    %52 = arith.divf %49, %51 : vector<8x1xf32>
    %53 = arith.mulf %46, %52 : vector<8x1xf32>
    %54 = arith.subf %44, %53 : vector<8x1xf32>
    %cst_16 = arith.constant 5.000000e-01 : f32
    %55 = vector.broadcast %cst_16 : f32 to vector<8x1xf32>
    %56 = arith.cmpf ogt, %54, %55 : vector<8x1xf32>
    %57 = arith.extui %56 : vector<8x1xi1> to vector<8x1xi32>
    %58 = arith.sitofp %57 : vector<8x1xi32> to vector<8x1xf32>
    %cst_17 = arith.constant 5.000000e-01 : f32
    %59 = vector.broadcast %cst_17 : f32 to vector<8x1xf32>
    %60 = arith.cmpf ogt, %22, %59 : vector<8x1xf32>
    %61 = arith.extui %60 : vector<8x1xi1> to vector<8x1xi32>
    %62 = arith.sitofp %61 : vector<8x1xi32> to vector<8x1xf32>
    %cst_18 = arith.constant 5.000000e-01 : f32
    %63 = vector.broadcast %cst_18 : f32 to vector<8x1xf32>
    %64 = arith.cmpf ogt, %29, %63 : vector<8x1xf32>
    %65 = arith.extui %64 : vector<8x1xi1> to vector<8x1xi32>
    %66 = arith.sitofp %65 : vector<8x1xi32> to vector<8x1xf32>
    %67 = tpu.iota {dimensions = array<i32: 1>} : vector<8x128xi32>
    %c0_i32 = arith.constant 0 : i32
    %68 = vector.broadcast %c0_i32 : i32 to vector<8x128xi32>
    %69 = arith.cmpi eq, %67, %68 : vector<8x128xi32>
    %cst_19 = arith.constant 0.000000e+00 : f32
    %70 = vector.shape_cast %22 : vector<8x1xf32> to vector<8x1xf32>
    %71 = vector.broadcast %70 : vector<8x1xf32> to vector<8x128xf32>
    %72 = vector.broadcast %cst_19 : f32 to vector<8x128xf32>
    %73 = arith.select %69, %71, %72 : vector<8x128xi1>, vector<8x128xf32>
    %c1_i32 = arith.constant 1 : i32
    %74 = vector.broadcast %c1_i32 : i32 to vector<8x128xi32>
    %75 = arith.cmpi eq, %67, %74 : vector<8x128xi32>
    %76 = vector.shape_cast %29 : vector<8x1xf32> to vector<8x1xf32>
    %77 = vector.broadcast %76 : vector<8x1xf32> to vector<8x128xf32>
    %78 = arith.select %75, %77, %73 : vector<8x128xi1>, vector<8x128xf32>
    %c2_i32 = arith.constant 2 : i32
    %79 = vector.broadcast %c2_i32 : i32 to vector<8x128xi32>
    %80 = arith.cmpi eq, %67, %79 : vector<8x128xi32>
    %81 = vector.shape_cast %37 : vector<8x1xf32> to vector<8x1xf32>
    %82 = vector.broadcast %81 : vector<8x1xf32> to vector<8x128xf32>
    %83 = arith.select %80, %82, %78 : vector<8x128xi1>, vector<8x128xf32>
    %c3_i32 = arith.constant 3 : i32
    %84 = vector.broadcast %c3_i32 : i32 to vector<8x128xi32>
    %85 = arith.cmpi eq, %67, %84 : vector<8x128xi32>
    %86 = vector.shape_cast %58 : vector<8x1xf32> to vector<8x1xf32>
    %87 = vector.broadcast %86 : vector<8x1xf32> to vector<8x128xf32>
    %88 = arith.select %85, %87, %83 : vector<8x128xi1>, vector<8x128xf32>
    %c4_i32 = arith.constant 4 : i32
    %89 = vector.broadcast %c4_i32 : i32 to vector<8x128xi32>
    %90 = arith.cmpi eq, %67, %89 : vector<8x128xi32>
    %91 = vector.shape_cast %62 : vector<8x1xf32> to vector<8x1xf32>
    %92 = vector.broadcast %91 : vector<8x1xf32> to vector<8x128xf32>
    %93 = arith.select %90, %92, %88 : vector<8x128xi1>, vector<8x128xf32>
    %c5_i32 = arith.constant 5 : i32
    %94 = vector.broadcast %c5_i32 : i32 to vector<8x128xi32>
    %95 = arith.cmpi eq, %67, %94 : vector<8x128xi32>
    %96 = vector.shape_cast %66 : vector<8x1xf32> to vector<8x1xf32>
    %97 = vector.broadcast %96 : vector<8x1xf32> to vector<8x128xf32>
    %98 = arith.select %95, %97, %93 : vector<8x128xi1>, vector<8x128xf32>
    %c0_20 = arith.constant 0 : index
    %c0_21 = arith.constant 0 : index
    %99 = vector.load %arg4[%c0_20, %c0_21] : memref<8x128xf32, #tpu.memory_space<vmem>>, vector<8x128xf32>
    tpu.vector_store %arg4[%c0_20, %c0_21], %98 {strides = array<i32>} : memref<8x128xf32, #tpu.memory_space<vmem>>, vector<8x128xf32>,
    return
  }
  func.func @transform_0(%arg0: i32) -> i32 {
    %c0_i32 = arith.constant 0 : i32
    %c0_i32_0 = arith.constant 0 : i32
    return %c0_i32 : i32
  }
  func.func @transform_1(%arg0: i32) -> (i32, i32) {
    %c0_i32 = arith.constant 0 : i32
    %c0_i32_0 = arith.constant 0 : i32
    return %arg0, %c0_i32 : i32, i32
  }
  func.func @transform_2(%arg0: i32) -> (i32, i32) {
    %c0_i32 = arith.constant 0 : i32
    %c0_i32_0 = arith.constant 0 : i32
    %c0_i32_1 = arith.constant 0 : i32
    return %c0_i32, %c0_i32_0 : i32, i32
  }
  func.func @transform_3(%arg0: i32) -> (i32, i32) {
    %c0_i32 = arith.constant 0 : i32
    %c0_i32_0 = arith.constant 0 : i32
    return %arg0, %c0_i32 : i32, i32
  }
}

</mosaic_0001>

<bundles_post_ra>
// kernel: tpu_custom_call.1
= control target key start
LH: loop header
LB: loop body
LE: loop exit
PB: predicated region body
PF: predicated region fallthrough
CT: control target
= control target key end

     0   :  { %8 = vsyncpa [#allocation5], 0  ;;  %s476_s0 = inlined_call_operand.hbm [shape: f32[8], index: 0, kind: input, shape index: {}]   ;;  %s477_s1 = inlined_call_operand.hbm [shape: f32[8,32], index: 1, kind: input, shape index: {}]   ;;  %s478_s2 = inlined_call_operand.hbm [shape: f32[32,128], index: 2, kind: input, shape index: {}]   ;;  %s479_s3 = inlined_call_operand.hbm [shape: f32[8,128], index: 3, kind: output, shape index: {}]  }
   0x1   :  { %9 = vsyncpa [#allocation3], 0 }
   0x2   :  { %10 = vsyncpa [#allocation8], 0 }
   0x3   :  { %11 = vsyncpa [#allocation4], 0  ;;  %s309_s14 = scalar_lea.hbm %s476_s0, 16 }
   0x4   :  { %p310_p0 = scmp.ne.s32.totalorder %s476_s0, %s309_s14  ;;  %p313_p1 = scmp.lt.u32.totalorder %s309_s14, %s476_s0 }
   0x6   :  { %p315_p2 = pnand %p313_p1, %p310_p0 }
   0x8   :  { %318 = shalt.err (!%p315_p2)
}
   0x9   :  { %s393_s19 = smov [#allocation2]   ;;  %s394_s22 = smov [#allocation6]  }
   0xa   :  { %19 = dma.hbm_to_smem %s476_s0, 16, %s393_s19, [#allocation5]  }
   0xb   :  { %s26_s23 = sshll.u32 %s394_s22, 4  ;;  %s395_s24 = smov [#allocation7]   ;;  %s27_s23 = int_to_ptr.vmem [resolvable:$true] %s26_s23 }
   0xc   :  { %s35_s25 = sshll.u32 %s395_s24, 4  ;;  %s319_s28 = scalar_lea.hbm %s477_s1, 128  ;;  %s36_s25 = int_to_ptr.vmem [resolvable:$true] %s35_s25 }
   0xd   :  { %p320_p3 = scmp.ne.s32.totalorder %s477_s1, %s319_s28  ;;  %p323_p4 = scmp.lt.u32.totalorder %s319_s28, %s477_s1 }
   0xf   :  { %p325_p5 = pnand %p323_p4, %p320_p3 }
  0x11   :  { %328 = shalt.err (!%p325_p5)
}
  0x12   :  { %s329_s0 = scalar_lea.vmem %s27_s23, 128  ;;  %p334_p7 = scmp.lt.s32.totalorder %s27_s23, %s27_s23 }
  0x13   :  { %p330_p6 = scmp.ne.s32.totalorder %s27_s23, %s329_s0  ;;  %p335_p8 = scmp.lt.s32.totalorder %s329_s0, %s329_s0 }
  0x15   :  { %p336_p9 = por %p335_p8, %p334_p7 }
  0x17   :  { %p337_p10 = pnand %p336_p9, %p330_p6 }
  0x19   :  { %340 = shalt.err (!%p337_p10)
}
  0x1a   :  { %29 = dma.hbm_to_vmem [thread:$0]  %s477_s1, 128, %s27_s23, [#allocation3]  }
  0x1b   :  { %s341_s10 = scalar_lea.hbm %s478_s2, 512 }
  0x1c   :  { %p342_p11 = scmp.ne.s32.totalorder %s478_s2, %s341_s10  ;;  %p345_p12 = scmp.lt.u32.totalorder %s341_s10, %s478_s2 }
  0x1e   :  { %p347_p13 = pnand %p345_p12, %p342_p11 }
  0x20   :  { %350 = shalt.err (!%p347_p13)
}
  0x21   :  { %s351_s15 = scalar_lea.vmem %s36_s25, 512  ;;  %p356_p1 = scmp.lt.s32.totalorder %s36_s25, %s36_s25 }
  0x22   :  { %p352_p0 = scmp.ne.s32.totalorder %s36_s25, %s351_s15  ;;  %p357_p2 = scmp.lt.s32.totalorder %s351_s15, %s351_s15 }
  0x24   :  { %p358_p3 = por %p357_p2, %p356_p1 }
  0x26   :  { %p359_p4 = pnand %p358_p3, %p352_p0 }
  0x28   :  { %362 = shalt.err (!%p359_p4)
}
  0x29   :  { %s396_s1 = smov 128   ;;  %s397_s16 = smov 8  }
  0x2a   :  { %41 = dma.hbm_to_vmem [thread:$0]  %s478_s2, 512, %s36_s25, [#allocation8], %s396_s1, %s396_s1, %s397_s16  }
  0x2b   :  { %385 = dma.done.wait [#allocation5], 16  }
  0x2c   :  { %386 = vsyncadd [#allocation5], 4294967280 }
  0x2d   :  { %387 = dma.done.wait [#allocation3], 128  }
  0x2e   :  { %388 = vsyncadd [#allocation3], 4294967168 }
  0x2f   :  { %389 = dma.done.wait [#allocation8], 512  }
  0x30   :  { %390 = vsyncadd [#allocation8], 4294966784 }
  0x31   :  { %51 = sfence }
  0x32   :  { %v58_v0 = vld [vmem:[#allocation7] sm:$0xff]  ;;  %v59_v1 = vld [vmem:[#allocation7 + $0x8] sm:$0xff]  ;;  %v60_v2 = vld [vmem:[#allocation7 + $0x10] sm:$0xff]  ;;  %v398_v3 = vmov 0.0|0.0   ;;  %vm399_vm0 = vmmov 0   ;;  %v400_v6 = vmov 0.0   ;;  %v183_v52 = vlaneseq }
  0x33   :  { %269 = vmatprep.subr.bf16.mxu0 %v398_v3  ;;  %v270_v4 = vpack.c.bf16 %v59_v1, %v58_v0  ;;  %v61_v5 = vld [vmem:[#allocation7 + $0x18] sm:$0xff]  ;;  %266 = vmatprep.mubr.msk.f32.mxu0 %vm399_vm0, %v400_v6  ;;  %vm62_vm1 = vcmask 261120   ;;  %v401_v9 = vmov 0   ;;  %s52_s2 = sld [smem:[#allocation2]]  ;;  %s245_s19 = sld [smem:[#allocation2 + $0x1]]  ;;  %v402_v33 = vmov 1  }
  0x34   :  { %v273_v7 = vpack.c.bf16 %v61_v5, %v60_v2  ;;  %v57_v8 = vld [vmem:[#allocation6] sm:$0xff]  ;;  %286 = vset.pattern.permute.xlu0 %v401_v9  ;;  %288 = vset.pattern.permute.xlu1 %v401_v9  ;;  %s246_s20 = sld [smem:[#allocation2 + $0x2]]  ;;  %s247_s21 = sld [smem:[#allocation2 + $0x3]]  ;;  %v184_v54 = vand.u32 127, %v183_v52 }
  0x35   :  { %271 = vmatpush3.bf16.msra.mxu0 %v270_v4  ;;  %s248_s22 = sld [smem:[#allocation2 + $0x4]]  ;;  %s403_s23 = smov [#allocation9]  }
  0x36   :  { %272 = vmatprep.subr.bf16.mxu0 %v398_v3  ;;  %vm185_vm5 = vcmp.eq.s32.totalorder %v184_v54, 0  ;;  %vm192_vm6 = vcmp.eq.s32.totalorder %v184_v54, 1  ;;  %vm199_vm7 = vcmp.eq.s32.totalorder %v184_v54, 2  ;;  %vm206_vm8 = vcmp.eq.s32.totalorder %v184_v54, 3  ;;  %s234_s24 = sshll.u32 %s403_s23, 4  ;;  %s235_s24 = int_to_ptr.vmem [resolvable:$true] %s234_s24 }
  0x37   :  { %vm213_vm9 = vcmp.eq.s32.totalorder %v184_v54, 4  ;;  %vm220_vm10 = vcmp.eq.s32.totalorder %v184_v54, 5  ;;  %s363_s25 = scalar_lea.vmem %s235_s24, 128  ;;  %p368_p6 = scmp.lt.s32.totalorder %s235_s24, %s235_s24 }
  0x38   :  { %p364_p5 = scmp.ne.s32.totalorder %s235_s24, %s363_s25  ;;  %p369_p7 = scmp.lt.s32.totalorder %s363_s25, %s363_s25 }
  0x39   :  { %274 = vmatpush3.bf16.msra.mxu0 %v273_v7  ;;  %v136_v10 = vstv %s52_s2  ;;  %v140_v11 = vstv %s245_s19 }
  0x3a   :  { %v138_v13 = vstv %s246_s20  ;;  %v155_v27 = vstv %s247_s21  ;;  %p370_p8 = por %p369_p7, %p368_p6 }
  0x3b   :  { %v157_v28 = vstv %s248_s22 }
  0x3c   :  { %267 = vmatmul.mubr.msk.f32.vlgmr.msra.gmra.mrb[0].mxu0 %vm62_vm1, %v57_v8  ;;  %p371_p9 = pnand %p370_p8, %p364_p5 }
 0x10f   :  { %v132_v12 = vpop.f32.mrb[0].mxu0 }
 0x110   :  { %v137_v14 = vadd.f32 %v136_v10, %v132_v12  ;;  %v141_v15 = vadd.f32 %v140_v11, %v132_v12  ;;  %v268_v16 = vpop.f32.mrb[1].mxu0 }
 0x112   :  { %v139_v17 = vmul.f32 %v138_v13, %v137_v14  ;;  %v148_v18 = vsub.f32 0.0, %v141_v15 }
 0x114   :  { %v142_v19 = vsub.f32 0.0, %v139_v17  ;;  %v149_v20 = vmul.f32 1.442695, %v148_v18 }
 0x116   :  { %v143_v21 = vmul.f32 1.442695, %v142_v19 }
 0x118   :  { %295 = vpow2.f32 %v143_v21 }
 0x119   :  { %297 = vpow2.f32 %v149_v20 }
 0x122   :  { %v296_v22 = vpop.eup %295 }
 0x123   :  { %v298_v23 = vpop.eup %297  ;;  %v145_v24 = vadd.f32 1.0, %v296_v22 }
 0x124   :  { %v151_v25 = vadd.f32 1.0, %v298_v23 }
 0x125   :  { %299 = vrcp.f32 %v145_v24 }
 0x126   :  { %301 = vrcp.f32 %v151_v25 }
 0x12f   :  { %v300_v26 = vpop.eup %299 }
 0x130   :  { %188 = vperm.xlu0 %286, %v300_v26   ;;  %v154_v29 = vsub.f32 1.0, %v300_v26  ;;  %v158_v31 = vmul.f32 %v300_v26, %v157_v28  ;;  %v302_v32 = vpop.eup %301  ;;  %vm177_vm2 = vcmp.gt.f32.partialorder %v300_v26, 0.5 }
 0x131   :  { %v251_v49 = vsel %vm177_vm2, 1.0, %v400_v6  ;;  %vm180_vm4 = vcmp.gt.f32.partialorder %v302_v32, 0.5 }
 0x132   :  { %v156_v30 = vmul.f32 %v155_v27, %v154_v29  ;;  %v252_v51 = vsel %vm180_vm4, 1.0, %v400_v6 }
 0x134   :  { %287 = vset.pattern.permute.xlu0 %v402_v33  ;;  %v159_v34 = vadd.f32 %v158_v31, %v156_v30 }
 0x135   :  { %195 = vperm.xlu0 %287, %v302_v32  }
 0x136   :  { %303 = vrcp.f32 %v159_v34 }
 0x140   :  { %v304_v35 = vpop.eup %303 }
 0x141   :  { %v161_v36 = vmul.f32 %v304_v35, %v158_v31 }
 0x143   :  { %202 = vperm.xlu1 %288, %v161_v36   ;;  %305 = vlog2.f32 %v161_v36  ;;  %v168_v37 = vsub.f32 1.0, %v161_v36  ;;  %v162_v43 = vsub.f32 0.0, %v161_v36 }
 0x145   :  { %307 = vlog2.f32 %v168_v37 }
 0x14d   :  { %v306_v38 = vpop.eup %305 }
 0x14e   :  { %v164_v39 = vmul.f32 0.6931472, %v306_v38 }
 0x14f   :  { %v308_v40 = vpop.eup %307 }
 0x150   :  { %v166_v41 = vmul.f32 1.442695, %v164_v39  ;;  %v170_v42 = vmul.f32 0.6931472, %v308_v40 }
 0x152   :  { %v171_v44 = vmul.f32 1.442695, %v170_v42  ;;  %v167_v45 = vmul.f32 %v166_v41, %v162_v43 }
 0x154   :  { %v172_v46 = vmul.f32 %v171_v44, %v168_v37 }
 0x156   :  { %v173_v47 = vsub.f32 %v167_v45, %v172_v46 }
 0x158   :  { %vm174_vm3 = vcmp.gt.f32.partialorder %v173_v47, 0.5 }
 0x159   :  { %v250_v48 = vsel %vm174_vm3, 1.0, %v400_v6 }
 0x15a   :  { %v289_v50 = vpack.i.bf16 %v251_v49, %v250_v48 }
 0x15c   :  { %290 = vperm.xlu1 %288, %v289_v50  }
 0x160   :  { %294 = vset.pattern.permute.xlu1 %v402_v33 }
 0x161   :  { %223 = vperm.xlu1 %294, %v252_v51  }
 0x1af   :  { %v189_v53 = vpop.permute.xlu0 %188 }
 0x1b0   :  { %v191_v57 = vsel %vm185_vm5, %v189_v53, 0.0 }
 0x1b4   :  { %v196_v56 = vpop.permute.xlu0 %195 }
 0x1b5   :  { %v198_v59 = vsel %vm192_vm6, %v196_v56, %v191_v57 }
 0x1c2   :  { %v203_v55 = vpop.permute.xlu1 %202 }
 0x1c3   :  { %v205_v62 = vsel %vm199_vm7, %v203_v55, %v198_v59 }
 0x1db   :  { %v291_v58 = vpop.permute.xlu1 %290 }
 0x1dc   :  { %v293_v60 = vunpack.i.h.bf16 %v291_v58  ;;  %v292_v61 = vunpack.i.l.bf16 %v291_v58 }
 0x1de   :  { %v212_v63 = vsel %vm206_vm8, %v292_v61, %v205_v62 }
 0x1df   :  { %v219_v0 = vsel %vm213_vm9, %v293_v60, %v212_v63 }
 0x1e0   :  { %v224_v1 = vpop.permute.xlu1 %223 }
 0x1e1   :  { %v226_v2 = vsel %vm220_vm10, %v224_v1, %v219_v0 }
 0x1e2   :  { %227 = vst [vmem:[#allocation9] sm:$0xff] %v226_v2 }
 0x1e3   :  { %374 = shalt.err (!%p371_p9)
}
 0x1e4   :  { %s375_s28 = scalar_lea.hbm %s479_s3, 128 }
 0x1e5   :  { %p376_p10 = scmp.ne.s32.totalorder %s479_s3, %s375_s28  ;;  %p379_p11 = scmp.lt.u32.totalorder %s375_s28, %s479_s3 }
 0x1e7   :  { %p381_p12 = pnand %p379_p11, %p376_p10 }
 0x1e9   :  { %384 = shalt.err (!%p381_p12)
}
 0x1ea   :  { %237 = dma.vmem_to_hbm [thread:$0]  %s235_s24, 128, %s479_s3, [#allocation4]  }
 0x1eb   :  { %391 = dma.done.wait [#allocation4], 128  }
 0x1ec   :  { %392 = vsyncadd [#allocation4], 4294967168 }
 0x1ed   :  { %241 = vsyncpa [#allocation3], 1 }
 0x1ee   :  { %242 = vsyncpa [#allocation8], 1 }
 0x1ef   :  { %243 = vsyncpa [#allocation4], 1 }
 0x1f0   :  { %244 = vsyncpa [#allocation5], 1 }

</bundles_post_ra>
